<compile_context>
chip_gen: v5e
topology: v5e:2x2
jax: 0.10.0
libtpu: 0.0.40
codegen_flags: <defaults>
</compile_context>

<pallas_src>
import numpy as np
import jax
import jax.numpy as jnp
from jax.experimental import pallas as pl
from jax.experimental.pallas import tpu as pltpu


# ----------------------------------------------------------------------------
# Host-side constants (ports of image2patch.__init__ / ave_mask_com).
# ----------------------------------------------------------------------------
def _patch_offsets(image_size, psize, stride):
    """Top-left (row, col) offsets of every kept patch, in mask order."""
    window_size = image_size + 1 - psize
    cur = np.arange(0, window_size, stride)
    if cur[-1] != window_size - 1:
        cur = np.concatenate([cur, np.array([window_size - 1])])
    cur = [int(v) for v in cur]
    r_off = [rr for rr in cur for _ in cur]     # repeat -> patch top rows
    c_off = [cc for _ in cur for cc in cur]     # tile   -> patch left cols
    return r_off, c_off, window_size


def _selection_matrix(image_size, psize, stride):
    """One-hot S of shape (H*W, M*P*P): S[p, m*P*P + i*P + j] = 1 iff image
    pixel p is the (i, j) element of kept patch m.  Then
        x_flat @ S     == to_patch + mask selection (image2patch)
        y_flat @ S.T   == to_image scatter-add      (patch2image, pre-average)
        S.sum(axis=1)  == ave_mask_com coverage counts.
    """
    r_off, c_off, _ = _patch_offsets(image_size, psize, stride)
    P = psize
    HW = image_size * image_size
    S = np.zeros((HW, len(r_off) * P * P), dtype=np.float32)
    for m, (rr, cc) in enumerate(zip(r_off, c_off)):
        for i in range(P):
            for j in range(P):
                S[(rr + i) * image_size + (cc + j), m * P * P + i * P + j] = 1.0
    counts = S.sum(axis=1)
    return S, counts


# ----------------------------------------------------------------------------
# Kernel 1: standalone image2patch (patch_tf.forward) as one selection matmul.
# ----------------------------------------------------------------------------
def _image2patch_kernel(x_ref, s_ref, o_ref):
    # x_ref: (B, H*W)   s_ref: (H*W, M*P*P) one-hot   o_ref: (B, M*P*P)
    # One MXU matmul + one wide lane-dense store; no per-patch slicing, no
    # XLU reshape/concat chain, no masked stores.
    o_ref[...] = jnp.dot(x_ref[...], s_ref[...],
                         preferred_element_type=jnp.float32).astype(o_ref.dtype)


def image2patch_forward(x, *, psize=6, stride=2, as_patches=True):
    """JAX/Pallas port of image2patch(image_size=H, psize, stride)(x).

    x: (B, 1, H, W).  Returns (B, M, P*P) if as_patches else lane-dense
    (B, M*P*P).  Prefer as_patches=False (or the fused branch kernel below):
    the (B, M*P*P) -> (B, M, P*P) reshape is an XLA relayout under TPU (8,128)
    tiling, NOT free metadata, and a 36-lane last dim is lane-sparse for
    whatever consumes it.
    """
    B, C, H, W = x.shape
    assert C == 1 and H == W, "module implies a single-channel square image"
    S, _ = _selection_matrix(H, psize, stride)
    MPP = S.shape[1]
    PP = psize * psize

    x_flat = x.reshape(B, H * W)            # XLA flatten -> lane-dense kernel input
    out_flat = pl.pallas_call(
        _image2patch_kernel,
        out_shape=jax.ShapeDtypeStruct((B, MPP), x.dtype),
        in_specs=[pl.BlockSpec(memory_space=pltpu.MemorySpace.VMEM)] * 2,
        out_specs=pl.BlockSpec(memory_space=pltpu.MemorySpace.VMEM),
    )(x_flat, jnp.asarray(S, x.dtype))
    if not as_patches:
        return out_flat
    return out_flat.reshape(B, MPP // PP, PP)   # XLA relayout (see docstring)


# ----------------------------------------------------------------------------
# Kernel 2: fused patch/GCN branch of IterBlock.forward:
#   patch = image2patch(x); h = relu(gcn_36_64(patch, adj));
#   h = gcn_64_36(h, adj); tmp3 = patch2image(h)        (ave mode)
# One pallas_call, everything VMEM-resident, all heavy ops on the MXU.
# ----------------------------------------------------------------------------
def _gcn_branch_kernel(x_ref, s_ref, st_ref, inv_ref, adj_ref,
                       w1_ref, b1_ref, w2_ref, b2_ref, o_ref):
    B, _ = x_ref.shape
    MPP = s_ref.shape[1]
    PP, F1 = w1_ref.shape
    M = MPP // PP

    # -- image2patch: one one-hot selection matmul, lane-dense (B, M*PP). -----
    patch_flat = jnp.dot(x_ref[...], s_ref[...],
                         preferred_element_type=jnp.float32)

    # -- two gcn_modules.  adj is per-sample (out[i] = adj[i] @ support[i]);
    #    B is tiny and static, so a fully unrolled per-sample loop of plain
    #    2-D MXU matmuls is used.  (For large B, put batch on a "parallel"
    #    grid axis instead of growing this unroll.) --------------------------
    h2_rows = []
    for b in range(B):
        patch_b = patch_flat[b:b + 1, :].reshape(M, PP)          # VMEM relayout
        adj_b = adj_ref[b]                                        # (M, M)
        sup1 = jnp.dot(patch_b, w1_ref[...], preferred_element_type=jnp.float32)
        h1 = jnp.dot(adj_b, sup1, preferred_element_type=jnp.float32) + b1_ref[...]
        h1 = jnp.maximum(h1, 0.0)                                 # ReLU (block3)
        sup2 = jnp.dot(h1, w2_ref[...], preferred_element_type=jnp.float32)
        h2 = jnp.dot(adj_b, sup2, preferred_element_type=jnp.float32) + b2_ref[...]
        h2_rows.append(h2.reshape(1, MPP))                        # back to lane-dense
    h2_flat = jnp.concatenate(h2_rows, axis=0)                    # (B, M*PP)

    # -- patch2image ('ave' mode): to_image's scatter-add is exactly the
    #    transposed selection, i.e. one more MXU matmul; the average is one
    #    VPU multiply by precomputed 1/coverage.  One lane-dense store. -------
    img = jnp.dot(h2_flat, st_ref[...], preferred_element_type=jnp.float32)
    o_ref[...] = (img * inv_ref[...]).astype(o_ref.dtype)


def gcn_branch_forward(x, adj, w1, b1, w2, b2, *, psize=6, stride=2,
                       out_dtype=None):
    """tmp3 branch of IterBlock.forward:
       patch2image(gcn2(relu(gcn1(image2patch(x), adj)), adj)).

    x: (B,1,H,W), adj: (B,M,M), w1: (PP,F1), b1: (F1,), w2: (F1,PP), b2: (PP,).
    Compute is f32 in-kernel; `out_dtype` lets a bf16 consumer get the cast at
    the final store (halves output bytes, per the v6e review note).
    """
    B, C, H, W = x.shape
    assert C == 1 and H == W, "module implies a single-channel square image"
    PP = psize * psize
    F1 = w1.shape[1]
    S, counts = _selection_matrix(H, psize, stride)
    M = S.shape[1] // PP
    assert adj.shape == (B, M, M)
    assert w1.shape == (PP, F1) and w2.shape == (F1, PP)
    assert b1.shape == (F1,) and b2.shape == (PP,)
    assert counts.min() > 0.0, "every pixel must be covered by some patch"
    out_dtype = x.dtype if out_dtype is None else out_dtype

    f32 = jnp.float32
    x_flat = x.reshape(B, H * W).astype(f32)   # XLA flatten -> lane-dense input
    args = (
        x_flat,
        jnp.asarray(S, f32),                               # selection    (HW, M*PP)
        jnp.asarray(np.ascontiguousarray(S.T), f32),       # scatter-back (M*PP, HW)
        jnp.asarray((1.0 / counts).reshape(1, H * W), f32),
        jnp.asarray(adj, f32),
        jnp.asarray(w1, f32),
        jnp.asarray(b1, f32).reshape(1, F1),
        jnp.asarray(w2, f32),
        jnp.asarray(b2, f32).reshape(1, PP),
    )
    out_flat = pl.pallas_call(
        _gcn_branch_kernel,
        out_shape=jax.ShapeDtypeStruct((B, H * W), out_dtype),
        in_specs=[pl.BlockSpec(memory_space=pltpu.MemorySpace.VMEM)] * len(args),
        out_specs=pl.BlockSpec(memory_space=pltpu.MemorySpace.VMEM),
    )(*args)
    # (B, H*W) -> (B, 1, H, W): done ONCE outside the kernel by XLA.  This is
    # an honest relayout under TPU tiling (16-lane rows), not free metadata.
    return out_flat.reshape(B, 1, H, W)


# ----------------------------------------------------------------------------
# Pure-numpy references (ports of to_patch / gcn_module / to_image) for checks.
# ----------------------------------------------------------------------------
def image2patch_reference(x, psize, stride):
    x = np.asarray(x, np.float64)
    B, C, H, W = x.shape
    ws = H + 1 - psize
    patch_set = np.zeros((B, ws * ws, psize * psize), dtype=np.float64)
    for i in range(psize):
        for j in range(psize):
            patch_set[:, :, i * psize + j] = x[:, 0, i:i + ws, j:j + ws].reshape(B, -1)
    r_off, c_off, _ = _patch_offsets(H, psize, stride)
    mask = np.asarray(r_off) * ws + np.asarray(c_off)
    return patch_set[:, mask]


def gcn_branch_reference(x, adj, w1, b1, w2, b2, psize, stride):
    x, adj = np.asarray(x, np.float64), np.asarray(adj, np.float64)
    w1, b1 = np.asarray(w1, np.float64), np.asarray(b1, np.float64)
    w2, b2 = np.asarray(w2, np.float64), np.asarray(b2, np.float64)
    B, _, H, _ = x.shape
    P = psize
    patch = image2patch_reference(x, psize, stride)                   # (B, M, PP)
    M = patch.shape[1]
    sup1 = (patch.reshape(B * M, -1) @ w1).reshape(B, M, -1)
    h1 = np.maximum(np.einsum("bij,bjf->bif", adj, sup1) + b1, 0.0)
    sup2 = (h1.reshape(B * M, -1) @ w2).reshape(B, M, -1)
    h2 = np.einsum("bij,bjf->bif", adj, sup2) + b2
    r_off, c_off, _ = _patch_offsets(H, psize, stride)
    out = np.zeros((B, H, H), np.float64)
    counts = np.zeros((H, H), np.float64)
    for m, (rr, cc) in enumerate(zip(r_off, c_off)):
        out[:, rr:rr + P, cc:cc + P] += h2[:, m].reshape(B, P, P)
        counts[rr:rr + P, cc:cc + P] += 1.0
    return (out / counts).reshape(B, 1, H, H)


if __name__ == "__main__":
    psize, stride = 6, 2
    B, H = 2, 16
    PP, F1 = psize * psize, 64
    M = len(_patch_offsets(H, psize, stride)[0])        # 36 patches for 16x16

    key = jax.random.PRNGKey(0)
    kx, kx2, ka, kw1, kb1, kw2, kb2 = jax.random.split(key, 7)
    x = jax.random.normal(kx, (B, 1, H, H), dtype=jnp.float32)
    adj = jax.random.normal(ka, (B, M, M), dtype=jnp.float32) * 0.25
    w1 = jax.random.normal(kw1, (PP, F1), dtype=jnp.float32) * 0.2
    b1 = jax.random.normal(kb1, (F1,), dtype=jnp.float32) * 0.1
    w2 = jax.random.normal(kw2, (F1, PP), dtype=jnp.float32) * 0.2
    b2 = jax.random.normal(kb2, (PP,), dtype=jnp.float32) * 0.1

    # 1) standalone image2patch (selection-matmul kernel) vs numpy reference.
    patches = jax.block_until_ready(
        image2patch_forward(x, psize=psize, stride=stride))
    ref_p = image2patch_reference(x, psize, stride)
    assert patches.shape == ref_p.shape, (patches.shape, ref_p.shape)
    np.testing.assert_allclose(np.asarray(patches), ref_p, rtol=2e-2, atol=2e-2)

    # 1b) irregular-tail case (window_size-1 not a multiple of stride): 17x17.
    x2 = jax.random.normal(kx2, (B, 1, 17, 17), dtype=jnp.float32)
    patches2 = jax.block_until_ready(
        image2patch_forward(x2, psize=psize, stride=stride))
    ref_p2 = image2patch_reference(x2, psize, stride)
    assert patches2.shape == ref_p2.shape, (patches2.shape, ref_p2.shape)
    np.testing.assert_allclose(np.asarray(patches2), ref_p2, rtol=2e-2, atol=2e-2)

    # 2) fused patch/GCN branch kernel vs numpy reference.
    out = jax.block_until_ready(
        gcn_branch_forward(x, adj, w1, b1, w2, b2, psize=psize, stride=stride))
    ref = gcn_branch_reference(x, adj, w1, b1, w2, b2, psize, stride)
    assert out.shape == ref.shape, (out.shape, ref.shape)
    np.testing.assert_allclose(np.asarray(out), ref, rtol=2e-2, atol=2e-2)

    print("KERNEL_OK")
</pallas_src>

<mosaic_0001>
module attributes {stable_mosaic.version = 11 : i64} {
  func.func @_image2patch_kernel(%arg0: memref<2x256xf32, #tpu.memory_space<vmem>>, %arg1: memref<256x1296xf32, #tpu.memory_space<vmem>>, %arg2: memref<2x1296xf32, #tpu.memory_space<vmem>>) attributes {dimension_semantics = [], scalar_prefetch = 0 : i64, scratch_operands = 0 : i64, tpu.core_type = #tpu.core_type<tc>} {
    %c0 = arith.constant 0 : index
    %c0_0 = arith.constant 0 : index
    %0 = vector.load %arg0[%c0, %c0_0] : memref<2x256xf32, #tpu.memory_space<vmem>>, vector<2x256xf32>
    %c0_1 = arith.constant 0 : index
    %c0_2 = arith.constant 0 : index
    %1 = vector.load %arg1[%c0_1, %c0_2] : memref<256x1296xf32, #tpu.memory_space<vmem>>, vector<256x1296xf32>
    %cst = arith.constant dense<0.000000e+00> : vector<2x1296xf32>
    %2 = tpu.matmul %0, %1, %cst {dimension_numbers = #tpu.dot_dimension_numbers<[1], [0], [0], [1], [0, 0, 1, 1], [], []>} : vector<2x256xf32>, vector<256x1296xf32>, vector<2x1296xf32> -> vector<2x1296xf32>
    %c0_3 = arith.constant 0 : index
    %c0_4 = arith.constant 0 : index
    %3 = vector.load %arg2[%c0_3, %c0_4] : memref<2x1296xf32, #tpu.memory_space<vmem>>, vector<2x1296xf32>
    tpu.vector_store %arg2[%c0_3, %c0_4], %2 {strides = array<i32>} : memref<2x1296xf32, #tpu.memory_space<vmem>>, vector<2x1296xf32>,
    return
  }
}

</mosaic_0001>

<bundles_post_ra>
// kernel: tpu_custom_call.1
= control target key start
LH: loop header
LB: loop body
LE: loop exit
PB: predicated region body
PF: predicated region fallthrough
CT: control target
= control target key end

     0   :  { %s2007_s0 = inlined_call_operand.vmem [shape: f32[2,256], index: 0, kind: input, shape index: {}]   ;;  %s2008_s1 = inlined_call_operand.vmem [shape: f32[256,1296], index: 1, kind: input, shape index: {}]   ;;  %s2009_s2 = inlined_call_operand.hbm [shape: f32[2,1296], index: 2, kind: output, shape index: {}]  }
   0x1   :  { %v178_v0 = vld [vmem:[%s2008_s1 + $0x528] sm:$0xff]  ;;  %v179_v2 = vld [vmem:[%s2008_s1 + $0x530] sm:$0xff]  ;;  %v168_v6 = vld [vmem:[%s2008_s1 + $0x4d8] sm:$0xff] }
   0x2   :  { %v354_v1 = vld [vmem:[%s2008_s1 + $0xaa8] sm:$0xff]  ;;  %371 = vmatpush.msra.mxu0 %v178_v0  ;;  %v355_v3 = vld [vmem:[%s2008_s1 + $0xab0] sm:$0xff]  ;;  %411 = vmatpush.msra.mxu2 %v179_v2  ;;  %v344_v7 = vld [vmem:[%s2008_s1 + $0xa58] sm:$0xff] }
   0x3   :  { %391 = vmatpush.msra.mxu1 %v354_v1  ;;  %v167_v4 = vld [vmem:[%s2008_s1 + $0x4d0] sm:$0xff]  ;;  %431 = vmatpush.msra.mxu3 %v355_v3  ;;  %v156_v8 = vld [vmem:[%s2008_s1 + $0x478] sm:$0xff]  ;;  %v157_v10 = vld [vmem:[%s2008_s1 + $0x480] sm:$0xff] }
   0x4   :  { %v343_v5 = vld [vmem:[%s2008_s1 + $0xa50] sm:$0xff]  ;;  %372 = vmatpush.msra.mxu0 %v167_v4  ;;  %v332_v9 = vld [vmem:[%s2008_s1 + $0x9f8] sm:$0xff]  ;;  %v333_v11 = vld [vmem:[%s2008_s1 + $0xa00] sm:$0xff]  ;;  %412 = vmatpush.msra.mxu2 %v168_v6 }
   0x5   :  { %392 = vmatpush.msra.mxu1 %v343_v5  ;;  %432 = vmatpush.msra.mxu3 %v344_v7  ;;  %v145_v12 = vld [vmem:[%s2008_s1 + $0x420] sm:$0xff]  ;;  %v146_v14 = vld [vmem:[%s2008_s1 + $0x428] sm:$0xff]  ;;  %v135_v18 = vld [vmem:[%s2008_s1 + $0x3d0] sm:$0xff] }
   0x6   :  { %v321_v13 = vld [vmem:[%s2008_s1 + $0x9a0] sm:$0xff]  ;;  %373 = vmatpush.msra.mxu0 %v156_v8  ;;  %v322_v15 = vld [vmem:[%s2008_s1 + $0x9a8] sm:$0xff]  ;;  %413 = vmatpush.msra.mxu2 %v157_v10  ;;  %v311_v19 = vld [vmem:[%s2008_s1 + $0x950] sm:$0xff] }
   0x7   :  { %393 = vmatpush.msra.mxu1 %v332_v9  ;;  %433 = vmatpush.msra.mxu3 %v333_v11  ;;  %v134_v16 = vld [vmem:[%s2008_s1 + $0x3c8] sm:$0xff]  ;;  %v123_v20 = vld [vmem:[%s2008_s1 + $0x370] sm:$0xff]  ;;  %v124_v22 = vld [vmem:[%s2008_s1 + $0x378] sm:$0xff] }
   0x8   :  { %v310_v17 = vld [vmem:[%s2008_s1 + $0x948] sm:$0xff]  ;;  %374 = vmatpush.msra.mxu0 %v145_v12  ;;  %414 = vmatpush.msra.mxu2 %v146_v14  ;;  %v299_v21 = vld [vmem:[%s2008_s1 + $0x8f0] sm:$0xff]  ;;  %v300_v23 = vld [vmem:[%s2008_s1 + $0x8f8] sm:$0xff] }
   0x9   :  { %394 = vmatpush.msra.mxu1 %v321_v13  ;;  %434 = vmatpush.msra.mxu3 %v322_v15  ;;  %v112_v24 = vld [vmem:[%s2008_s1 + $0x318] sm:$0xff]  ;;  %v113_v26 = vld [vmem:[%s2008_s1 + $0x320] sm:$0xff]  ;;  %v102_v30 = vld [vmem:[%s2008_s1 + $0x2c8] sm:$0xff] }
   0xa   :  { %375 = vmatpush.msra.mxu0 %v134_v16  ;;  %415 = vmatpush.msra.mxu2 %v135_v18  ;;  %v288_v25 = vld [vmem:[%s2008_s1 + $0x898] sm:$0xff]  ;;  %v289_v27 = vld [vmem:[%s2008_s1 + $0x8a0] sm:$0xff]  ;;  %v278_v31 = vld [vmem:[%s2008_s1 + $0x848] sm:$0xff] }
   0xb   :  { %395 = vmatpush.msra.mxu1 %v310_v17  ;;  %435 = vmatpush.msra.mxu3 %v311_v19  ;;  %v101_v28 = vld [vmem:[%s2008_s1 + $0x2c0] sm:$0xff]  ;;  %v90_v32 = vld [vmem:[%s2008_s1 + $0x268] sm:$0xff]  ;;  %v91_v34 = vld [vmem:[%s2008_s1 + $0x270] sm:$0xff] }
   0xc   :  { %376 = vmatpush.msra.mxu0 %v123_v20  ;;  %416 = vmatpush.msra.mxu2 %v124_v22  ;;  %v277_v29 = vld [vmem:[%s2008_s1 + $0x840] sm:$0xff]  ;;  %v266_v33 = vld [vmem:[%s2008_s1 + $0x7e8] sm:$0xff]  ;;  %v267_v35 = vld [vmem:[%s2008_s1 + $0x7f0] sm:$0xff] }
   0xd   :  { %396 = vmatpush.msra.mxu1 %v299_v21  ;;  %436 = vmatpush.msra.mxu3 %v300_v23  ;;  %v79_v36 = vld [vmem:[%s2008_s1 + $0x210] sm:$0xff]  ;;  %v80_v38 = vld [vmem:[%s2008_s1 + $0x218] sm:$0xff]  ;;  %v69_v42 = vld [vmem:[%s2008_s1 + $0x1c0] sm:$0xff] }
   0xe   :  { %377 = vmatpush.msra.mxu0 %v112_v24  ;;  %417 = vmatpush.msra.mxu2 %v113_v26  ;;  %v255_v37 = vld [vmem:[%s2008_s1 + $0x790] sm:$0xff]  ;;  %v256_v39 = vld [vmem:[%s2008_s1 + $0x798] sm:$0xff]  ;;  %v245_v43 = vld [vmem:[%s2008_s1 + $0x740] sm:$0xff] }
   0xf   :  { %397 = vmatpush.msra.mxu1 %v288_v25  ;;  %437 = vmatpush.msra.mxu3 %v289_v27  ;;  %v68_v40 = vld [vmem:[%s2008_s1 + $0x1b8] sm:$0xff]  ;;  %v57_v44 = vld [vmem:[%s2008_s1 + $0x160] sm:$0xff]  ;;  %v58_v46 = vld [vmem:[%s2008_s1 + $0x168] sm:$0xff] }
  0x10   :  { %378 = vmatpush.msra.mxu0 %v101_v28  ;;  %418 = vmatpush.msra.mxu2 %v102_v30  ;;  %v244_v41 = vld [vmem:[%s2008_s1 + $0x738] sm:$0xff]  ;;  %v233_v45 = vld [vmem:[%s2008_s1 + $0x6e0] sm:$0xff]  ;;  %v234_v47 = vld [vmem:[%s2008_s1 + $0x6e8] sm:$0xff] }
  0x11   :  { %398 = vmatpush.msra.mxu1 %v277_v29  ;;  %438 = vmatpush.msra.mxu3 %v278_v31  ;;  %v46_v48 = vld [vmem:[%s2008_s1 + $0x108] sm:$0xff]  ;;  %v47_v50 = vld [vmem:[%s2008_s1 + $0x110] sm:$0xff]  ;;  %v36_v54 = vld [vmem:[%s2008_s1 + $0xb8] sm:$0xff] }
  0x12   :  { %379 = vmatpush.msra.mxu0 %v90_v32  ;;  %419 = vmatpush.msra.mxu2 %v91_v34  ;;  %v222_v49 = vld [vmem:[%s2008_s1 + $0x688] sm:$0xff]  ;;  %v223_v51 = vld [vmem:[%s2008_s1 + $0x690] sm:$0xff]  ;;  %v212_v55 = vld [vmem:[%s2008_s1 + $0x638] sm:$0xff] }
  0x13   :  { %399 = vmatpush.msra.mxu1 %v266_v33  ;;  %439 = vmatpush.msra.mxu3 %v267_v35  ;;  %v35_v52 = vld [vmem:[%s2008_s1 + $0xb0] sm:$0xff]  ;;  %v24_v56 = vld [vmem:[%s2008_s1 + $0x58] sm:$0xff]  ;;  %v25_v58 = vld [vmem:[%s2008_s1 + $0x60] sm:$0xff] }
  0x14   :  { %380 = vmatpush.msra.mxu0 %v79_v36  ;;  %420 = vmatpush.msra.mxu2 %v80_v38  ;;  %v211_v53 = vld [vmem:[%s2008_s1 + $0x630] sm:$0xff]  ;;  %v200_v57 = vld [vmem:[%s2008_s1 + $0x5d8] sm:$0xff]  ;;  %v201_v59 = vld [vmem:[%s2008_s1 + $0x5e0] sm:$0xff] }
  0x15   :  { %400 = vmatpush.msra.mxu1 %v255_v37  ;;  %440 = vmatpush.msra.mxu3 %v256_v39  ;;  %v13_v60 = vld [vmem:[%s2008_s1] sm:$0xff]  ;;  %v14_v62 = vld [vmem:[%s2008_s1 + $0x8] sm:$0xff]  ;;  %v180_v0 = vld [vmem:[%s2008_s1 + $0x538] sm:$0xff] }
  0x16   :  { %381 = vmatpush.msra.mxu0 %v68_v40  ;;  %421 = vmatpush.msra.mxu2 %v69_v42  ;;  %v189_v61 = vld [vmem:[%s2008_s1 + $0x580] sm:$0xff]  ;;  %v190_v63 = vld [vmem:[%s2008_s1 + $0x588] sm:$0xff]  ;;  %v356_v1 = vld [vmem:[%s2008_s1 + $0xab8] sm:$0xff] }
  0x17   :  { %401 = vmatpush.msra.mxu1 %v244_v41  ;;  %441 = vmatpush.msra.mxu3 %v245_v43  ;;  %v181_v2 = vld [vmem:[%s2008_s1 + $0x540] sm:$0xff]  ;;  %v170_v6 = vld [vmem:[%s2008_s1 + $0x4e8] sm:$0xff]  ;;  %v159_v10 = vld [vmem:[%s2008_s1 + $0x490] sm:$0xff] }
  0x18   :  { %382 = vmatpush.msra.mxu0 %v57_v44  ;;  %422 = vmatpush.msra.mxu2 %v58_v46  ;;  %v357_v3 = vld [vmem:[%s2008_s1 + $0xac0] sm:$0xff]  ;;  %v346_v7 = vld [vmem:[%s2008_s1 + $0xa68] sm:$0xff]  ;;  %v335_v11 = vld [vmem:[%s2008_s1 + $0xa10] sm:$0xff] }
  0x19   :  { %402 = vmatpush.msra.mxu1 %v233_v45  ;;  %442 = vmatpush.msra.mxu3 %v234_v47  ;;  %v169_v4 = vld [vmem:[%s2008_s1 + $0x4e0] sm:$0xff]  ;;  %v158_v8 = vld [vmem:[%s2008_s1 + $0x488] sm:$0xff]  ;;  %v147_v12 = vld [vmem:[%s2008_s1 + $0x430] sm:$0xff] }
  0x1a   :  { %383 = vmatpush.msra.mxu0 %v46_v48  ;;  %423 = vmatpush.msra.mxu2 %v47_v50  ;;  %v345_v5 = vld [vmem:[%s2008_s1 + $0xa60] sm:$0xff]  ;;  %v334_v9 = vld [vmem:[%s2008_s1 + $0xa08] sm:$0xff]  ;;  %v323_v13 = vld [vmem:[%s2008_s1 + $0x9b0] sm:$0xff] }
  0x1b   :  { %403 = vmatpush.msra.mxu1 %v222_v49  ;;  %443 = vmatpush.msra.mxu3 %v223_v51  ;;  %v148_v14 = vld [vmem:[%s2008_s1 + $0x438] sm:$0xff]  ;;  %v12_v16 = vld [vmem:[%s2007_s0] sm:$0xf]  ;;  %v126_v23 = vld [vmem:[%s2008_s1 + $0x388] sm:$0xff] }
  0x1c   :  { %384 = vmatpush.msra.mxu0 %v35_v52  ;;  %424 = vmatpush.msra.mxu2 %v36_v54  ;;  %v324_v15 = vld [vmem:[%s2008_s1 + $0x9b8] sm:$0xff]  ;;  %366 = vst [vmem:[#allocation1] ss:$4 sm:$0xff] %v12_v16  ;;  %v137_v19 = vld [vmem:[%s2008_s1 + $0x3e0] sm:$0xff]  ;;  %v302_v24 = vld [vmem:[%s2008_s1 + $0x908] sm:$0xff] }
  0x1d   :  { %404 = vmatpush.msra.mxu1 %v211_v53  ;;  %444 = vmatpush.msra.mxu3 %v212_v55  ;;  %v136_v17 = vld [vmem:[%s2008_s1 + $0x3d8] sm:$0xff]  ;;  %v313_v20 = vld [vmem:[%s2008_s1 + $0x960] sm:$0xff]  ;;  %v114_v25 = vld [vmem:[%s2008_s1 + $0x328] sm:$0xff] }
  0x1e   :  { %385 = vmatpush.msra.mxu0 %v24_v56  ;;  %425 = vmatpush.msra.mxu2 %v25_v58  ;;  %v312_v18 = vld [vmem:[%s2008_s1 + $0x958] sm:$0xff]  ;;  %v125_v21 = vld [vmem:[%s2008_s1 + $0x380] sm:$0xff]  ;;  %v290_v26 = vld [vmem:[%s2008_s1 + $0x8a8] sm:$0xff] }
  0x1f   :  { %405 = vmatpush.msra.mxu1 %v200_v57  ;;  %445 = vmatpush.msra.mxu3 %v201_v59  ;;  %v301_v22 = vld [vmem:[%s2008_s1 + $0x900] sm:$0xff]  ;;  %v115_v27 = vld [vmem:[%s2008_s1 + $0x330] sm:$0xff]  ;;  %v104_v31 = vld [vmem:[%s2008_s1 + $0x2d8] sm:$0xff] }
  0x20   :  { %386 = vmatpush.msra.mxu0 %v13_v60  ;;  %426 = vmatpush.msra.mxu2 %v14_v62  ;;  %v291_v28 = vld [vmem:[%s2008_s1 + $0x8b0] sm:$0xff]  ;;  %v280_v32 = vld [vmem:[%s2008_s1 + $0x858] sm:$0xff]  ;;  %v93_v35 = vld [vmem:[%s2008_s1 + $0x280] sm:$0xff] }
  0x21   :  { %406 = vmatpush.msra.mxu1 %v189_v61  ;;  %446 = vmatpush.msra.mxu3 %v190_v63  ;;  %v103_v29 = vld [vmem:[%s2008_s1 + $0x2d0] sm:$0xff]  ;;  %v92_v33 = vld [vmem:[%s2008_s1 + $0x278] sm:$0xff]  ;;  %v269_v36 = vld [vmem:[%s2008_s1 + $0x800] sm:$0xff] }
  0x22   :  { %451 = vmatpush.msrb.mxu0 %v180_v0  ;;  %491 = vmatpush.msrb.mxu2 %v181_v2  ;;  %v279_v30 = vld [vmem:[%s2008_s1 + $0x850] sm:$0xff]  ;;  %v268_v34 = vld [vmem:[%s2008_s1 + $0x7f8] sm:$0xff]  ;;  %v81_v37 = vld [vmem:[%s2008_s1 + $0x220] sm:$0xff] }
  0x23   :  { %471 = vmatpush.msrb.mxu1 %v356_v1  ;;  %511 = vmatpush.msrb.mxu3 %v357_v3  ;;  %v257_v38 = vld [vmem:[%s2008_s1 + $0x7a0] sm:$0xff]  ;;  %v82_v39 = vld [vmem:[%s2008_s1 + $0x228] sm:$0xff]  ;;  %v71_v43 = vld [vmem:[%s2008_s1 + $0x1d0] sm:$0xff] }
  0x24   :  { %452 = vmatpush.msrb.mxu0 %v169_v4  ;;  %492 = vmatpush.msrb.mxu2 %v170_v6  ;;  %v258_v40 = vld [vmem:[%s2008_s1 + $0x7a8] sm:$0xff]  ;;  %v247_v44 = vld [vmem:[%s2008_s1 + $0x750] sm:$0xff]  ;;  %v60_v47 = vld [vmem:[%s2008_s1 + $0x178] sm:$0xff] }
  0x25   :  { %472 = vmatpush.msrb.mxu1 %v345_v5  ;;  %512 = vmatpush.msrb.mxu3 %v346_v7  ;;  %v70_v41 = vld [vmem:[%s2008_s1 + $0x1c8] sm:$0xff]  ;;  %v59_v45 = vld [vmem:[%s2008_s1 + $0x170] sm:$0xff]  ;;  %v236_v48 = vld [vmem:[%s2008_s1 + $0x6f8] sm:$0xff] }
  0x26   :  { %453 = vmatpush.msrb.mxu0 %v158_v8  ;;  %493 = vmatpush.msrb.mxu2 %v159_v10  ;;  %v246_v42 = vld [vmem:[%s2008_s1 + $0x748] sm:$0xff]  ;;  %v235_v46 = vld [vmem:[%s2008_s1 + $0x6f0] sm:$0xff]  ;;  %v1251_v49 = vld.sshfl [vmem:[#allocation1] sm:$0xff pattern:$0x73625140] }
  0x27   :  { %473 = vmatpush.msrb.mxu1 %v334_v9  ;;  %513 = vmatpush.msrb.mxu3 %v335_v11  ;;  %v1253_v50 = vld.sshfl [vmem:[#allocation1 + $0x8] sm:$0xff pattern:$0x73625140]  ;;  %v48_v51 = vld [vmem:[%s2008_s1 + $0x118] sm:$0xff]  ;;  %v49_v53 = vld [vmem:[%s2008_s1 + $0x120] sm:$0xff] }
  0x28   :  { %454 = vmatpush.msrb.mxu0 %v147_v12  ;;  %494 = vmatpush.msrb.mxu2 %v148_v14  ;;  %v224_v52 = vld [vmem:[%s2008_s1 + $0x698] sm:$0xff]  ;;  %v225_v54 = vld [vmem:[%s2008_s1 + $0x6a0] sm:$0xff]  ;;  %v38_v57 = vld [vmem:[%s2008_s1 + $0xc8] sm:$0xff] }
  0x29   :  { %474 = vmatpush.msrb.mxu1 %v323_v13  ;;  %514 = vmatpush.msrb.mxu3 %v324_v15  ;;  %v37_v55 = vld [vmem:[%s2008_s1 + $0xc0] sm:$0xff]  ;;  %v214_v58 = vld [vmem:[%s2008_s1 + $0x648] sm:$0xff]  ;;  %v27_v61 = vld [vmem:[%s2008_s1 + $0x70] sm:$0xff] }
  0x2a   :  { %455 = vmatpush.msrb.mxu0 %v136_v17  ;;  %495 = vmatpush.msrb.mxu2 %v137_v19  ;;  %v213_v56 = vld [vmem:[%s2008_s1 + $0x640] sm:$0xff]  ;;  %v26_v59 = vld [vmem:[%s2008_s1 + $0x68] sm:$0xff]  ;;  %v203_v62 = vld [vmem:[%s2008_s1 + $0x5f0] sm:$0xff] }
  0x2b   :  { %475 = vmatpush.msrb.mxu1 %v312_v18  ;;  %515 = vmatpush.msrb.mxu3 %v313_v20  ;;  %v202_v60 = vld [vmem:[%s2008_s1 + $0x5e8] sm:$0xff] }
  0x2c   :  { %456 = vmatpush.msrb.mxu0 %v125_v21  ;;  %496 = vmatpush.msrb.mxu2 %v126_v23 }
  0x2d   :  { %476 = vmatpush.msrb.mxu1 %v301_v22  ;;  %516 = vmatpush.msrb.mxu3 %v302_v24 }
  0x2e   :  { %457 = vmatpush.msrb.mxu0 %v114_v25  ;;  %497 = vmatpush.msrb.mxu2 %v115_v27 }
  0x2f   :  { %477 = vmatpush.msrb.mxu1 %v290_v26  ;;  %517 = vmatpush.msrb.mxu3 %v291_v28 }
  0x30   :  { %458 = vmatpush.msrb.mxu0 %v103_v29  ;;  %498 = vmatpush.msrb.mxu2 %v104_v31 }
  0x31   :  { %478 = vmatpush.msrb.mxu1 %v279_v30  ;;  %518 = vmatpush.msrb.mxu3 %v280_v32 }
  0x32   :  { %459 = vmatpush.msrb.mxu0 %v92_v33  ;;  %499 = vmatpush.msrb.mxu2 %v93_v35 }
  0x33   :  { %479 = vmatpush.msrb.mxu1 %v268_v34  ;;  %519 = vmatpush.msrb.mxu3 %v269_v36 }
  0x34   :  { %460 = vmatpush.msrb.mxu0 %v81_v37  ;;  %500 = vmatpush.msrb.mxu2 %v82_v39 }
  0x35   :  { %480 = vmatpush.msrb.mxu1 %v257_v38  ;;  %520 = vmatpush.msrb.mxu3 %v258_v40 }
  0x36   :  { %461 = vmatpush.msrb.mxu0 %v70_v41  ;;  %501 = vmatpush.msrb.mxu2 %v71_v43 }
  0x37   :  { %481 = vmatpush.msrb.mxu1 %v246_v42  ;;  %521 = vmatpush.msrb.mxu3 %v247_v44 }
  0x38   :  { %462 = vmatpush.msrb.mxu0 %v59_v45  ;;  %502 = vmatpush.msrb.mxu2 %v60_v47 }
  0x39   :  { %482 = vmatpush.msrb.mxu1 %v235_v46  ;;  %522 = vmatpush.msrb.mxu3 %v236_v48 }
  0x3a   :  { %427 = vmatmul.f32.vlgmr.msra.gmra.mxu2 %v1251_v49  ;;  %447 = vmatmul.f32.vlgmr.msra.gmra.mxu3 %v1253_v50 }
  0x3b   :  { %463 = vmatpush.msrb.mxu0 %v48_v51  ;;  %483 = vmatpush.msrb.mxu1 %v224_v52 }
  0x3c   :  { %503 = vmatpush.msrb.mxu2 %v49_v53  ;;  %523 = vmatpush.msrb.mxu3 %v225_v54 }
  0x3d   :  { %464 = vmatpush.msrb.mxu0 %v37_v55  ;;  %484 = vmatpush.msrb.mxu1 %v213_v56 }
  0x3e   :  { %7 = vsyncpa [#allocation3], 0  ;;  %504 = vmatpush.msrb.mxu2 %v38_v57  ;;  %524 = vmatpush.msrb.mxu3 %v214_v58  ;;  %v15_v63 = vld [vmem:[%s2008_s1 + $0x10] sm:$0xff]  ;;  %v16_v1 = vld [vmem:[%s2008_s1 + $0x18] sm:$0xff]  ;;  %vm830_vm0 = vcmask 1041408   ;;  %vm832_vm1 = vcmask 1045508  }
  0x3f   :  { %465 = vmatpush.msrb.mxu0 %v26_v59  ;;  %485 = vmatpush.msrb.mxu1 %v202_v60  ;;  %v191_v0 = vld [vmem:[%s2008_s1 + $0x590] sm:$0xff]  ;;  %v192_v2 = vld [vmem:[%s2008_s1 + $0x598] sm:$0xff]  ;;  %v182_v3 = vld [vmem:[%s2008_s1 + $0x548] sm:$0xff]  ;;  %vm834_vm2 = vcmask 1043456   ;;  %vm846_vm3 = vcmask 1043458   ;;  %vm848_vm5 = vcmask 128004  }
  0x40   :  { %505 = vmatpush.msrb.mxu2 %v27_v61  ;;  %525 = vmatpush.msrb.mxu3 %v203_v62  ;;  %v358_v4 = vld [vmem:[%s2008_s1 + $0xac8] sm:$0xff]  ;;  %v183_v5 = vld [vmem:[%s2008_s1 + $0x550] sm:$0xff]  ;;  %v172_v9 = vld [vmem:[%s2008_s1 + $0x4f8] sm:$0xff]  ;;  %s858_s27 = sshll.u32 %s2009_s2, 4  ;;  %s859_s27 = int_to_ptr.hbm [resolvable:$true] %s858_s27 }
  0x41   :  { %387 = vmatmul.f32.vlgmr.msra.gmra.mxu0 %v1251_v49  ;;  %407 = vmatmul.f32.vlgmr.msra.gmra.mxu1 %v1253_v50  ;;  %v359_v6 = vld [vmem:[%s2008_s1 + $0xad0] sm:$0xff]  ;;  %v348_v10 = vld [vmem:[%s2008_s1 + $0xa78] sm:$0xff]  ;;  %v161_v13 = vld [vmem:[%s2008_s1 + $0x4a0] sm:$0xff] }
  0x42   :  { %466 = vmatpush.msrb.mxu0 %v15_v63  ;;  %486 = vmatpush.msrb.mxu1 %v191_v0  ;;  %v171_v7 = vld [vmem:[%s2008_s1 + $0x4f0] sm:$0xff]  ;;  %v160_v11 = vld [vmem:[%s2008_s1 + $0x498] sm:$0xff]  ;;  %v337_v14 = vld [vmem:[%s2008_s1 + $0xa20] sm:$0xff] }
  0x43   :  { %506 = vmatpush.msrb.mxu2 %v16_v1  ;;  %526 = vmatpush.msrb.mxu3 %v192_v2  ;;  %v347_v8 = vld [vmem:[%s2008_s1 + $0xa70] sm:$0xff]  ;;  %v336_v12 = vld [vmem:[%s2008_s1 + $0xa18] sm:$0xff]  ;;  %v149_v15 = vld [vmem:[%s2008_s1 + $0x440] sm:$0xff] }
  0x44   :  { %507 = vmatmul.f32.vlgmr.msrb.gmra.mxu2 %v1251_v49  ;;  %527 = vmatmul.f32.vlgmr.msrb.gmra.mxu3 %v1253_v50  ;;  %v325_v16 = vld [vmem:[%s2008_s1 + $0x9c0] sm:$0xff]  ;;  %v150_v17 = vld [vmem:[%s2008_s1 + $0x448] sm:$0xff]  ;;  %v139_v21 = vld [vmem:[%s2008_s1 + $0x3f0] sm:$0xff] }
  0x45   :  { %531 = vmatpush.msra.mxu0 %v182_v3  ;;  %551 = vmatpush.msra.mxu1 %v358_v4  ;;  %v326_v18 = vld [vmem:[%s2008_s1 + $0x9c8] sm:$0xff]  ;;  %v315_v22 = vld [vmem:[%s2008_s1 + $0x970] sm:$0xff]  ;;  %v128_v25 = vld [vmem:[%s2008_s1 + $0x398] sm:$0xff] }
  0x46   :  { %571 = vmatpush.msra.mxu2 %v183_v5  ;;  %591 = vmatpush.msra.mxu3 %v359_v6  ;;  %v138_v19 = vld [vmem:[%s2008_s1 + $0x3e8] sm:$0xff]  ;;  %v127_v23 = vld [vmem:[%s2008_s1 + $0x390] sm:$0xff]  ;;  %v304_v26 = vld [vmem:[%s2008_s1 + $0x918] sm:$0xff] }
  0x47   :  { %532 = vmatpush.msra.mxu0 %v171_v7  ;;  %552 = vmatpush.msra.mxu1 %v347_v8  ;;  %v314_v20 = vld [vmem:[%s2008_s1 + $0x968] sm:$0xff]  ;;  %v303_v24 = vld [vmem:[%s2008_s1 + $0x910] sm:$0xff]  ;;  %v116_v27 = vld [vmem:[%s2008_s1 + $0x338] sm:$0xff] }
  0x48   :  { %572 = vmatpush.msra.mxu2 %v172_v9  ;;  %592 = vmatpush.msra.mxu3 %v348_v10  ;;  %v292_v28 = vld [vmem:[%s2008_s1 + $0x8b8] sm:$0xff]  ;;  %v117_v29 = vld [vmem:[%s2008_s1 + $0x340] sm:$0xff]  ;;  %v106_v33 = vld [vmem:[%s2008_s1 + $0x2e8] sm:$0xff] }
  0x49   :  { %533 = vmatpush.msra.mxu0 %v160_v11  ;;  %553 = vmatpush.msra.mxu1 %v336_v12  ;;  %v293_v30 = vld [vmem:[%s2008_s1 + $0x8c0] sm:$0xff]  ;;  %v282_v34 = vld [vmem:[%s2008_s1 + $0x868] sm:$0xff]  ;;  %v95_v37 = vld [vmem:[%s2008_s1 + $0x290] sm:$0xff] }
  0x4a   :  { %573 = vmatpush.msra.mxu2 %v161_v13  ;;  %593 = vmatpush.msra.mxu3 %v337_v14  ;;  %v105_v31 = vld [vmem:[%s2008_s1 + $0x2e0] sm:$0xff]  ;;  %v94_v35 = vld [vmem:[%s2008_s1 + $0x288] sm:$0xff]  ;;  %v271_v38 = vld [vmem:[%s2008_s1 + $0x810] sm:$0xff] }
  0x4b   :  { %467 = vmatmul.f32.vlgmr.msrb.gmra.mxu0 %v1251_v49  ;;  %487 = vmatmul.f32.vlgmr.msrb.gmra.mxu1 %v1253_v50  ;;  %v281_v32 = vld [vmem:[%s2008_s1 + $0x860] sm:$0xff]  ;;  %v270_v36 = vld [vmem:[%s2008_s1 + $0x808] sm:$0xff]  ;;  %v83_v39 = vld [vmem:[%s2008_s1 + $0x230] sm:$0xff] }
  0x4c   :  { %534 = vmatpush.msra.mxu0 %v149_v15  ;;  %554 = vmatpush.msra.mxu1 %v325_v16  ;;  %v259_v40 = vld [vmem:[%s2008_s1 + $0x7b0] sm:$0xff]  ;;  %v84_v41 = vld [vmem:[%s2008_s1 + $0x238] sm:$0xff]  ;;  %v73_v45 = vld [vmem:[%s2008_s1 + $0x1e0] sm:$0xff] }
  0x4d   :  { %574 = vmatpush.msra.mxu2 %v150_v17  ;;  %594 = vmatpush.msra.mxu3 %v326_v18  ;;  %v260_v42 = vld [vmem:[%s2008_s1 + $0x7b8] sm:$0xff]  ;;  %v249_v46 = vld [vmem:[%s2008_s1 + $0x760] sm:$0xff]  ;;  %v62_v51 = vld [vmem:[%s2008_s1 + $0x188] sm:$0xff] }
  0x4e   :  { %535 = vmatpush.msra.mxu0 %v138_v19  ;;  %555 = vmatpush.msra.mxu1 %v314_v20  ;;  %v72_v43 = vld [vmem:[%s2008_s1 + $0x1d8] sm:$0xff]  ;;  %v61_v47 = vld [vmem:[%s2008_s1 + $0x180] sm:$0xff]  ;;  %v238_v52 = vld [vmem:[%s2008_s1 + $0x708] sm:$0xff] }
  0x4f   :  { %575 = vmatpush.msra.mxu2 %v139_v21  ;;  %595 = vmatpush.msra.mxu3 %v315_v22  ;;  %v248_v44 = vld [vmem:[%s2008_s1 + $0x758] sm:$0xff]  ;;  %v237_v48 = vld [vmem:[%s2008_s1 + $0x700] sm:$0xff]  ;;  %v50_v53 = vld [vmem:[%s2008_s1 + $0x128] sm:$0xff] }
  0x50   :  { %536 = vmatpush.msra.mxu0 %v127_v23  ;;  %556 = vmatpush.msra.mxu1 %v303_v24  ;;  %v226_v54 = vld [vmem:[%s2008_s1 + $0x6a8] sm:$0xff]  ;;  %v51_v55 = vld [vmem:[%s2008_s1 + $0x130] sm:$0xff]  ;;  %v40_v59 = vld [vmem:[%s2008_s1 + $0xd8] sm:$0xff] }
  0x51   :  { %576 = vmatpush.msra.mxu2 %v128_v25  ;;  %596 = vmatpush.msra.mxu3 %v304_v26  ;;  %v227_v56 = vld [vmem:[%s2008_s1 + $0x6b0] sm:$0xff]  ;;  %v216_v60 = vld [vmem:[%s2008_s1 + $0x658] sm:$0xff]  ;;  %v29_v63 = vld [vmem:[%s2008_s1 + $0x80] sm:$0xff] }
  0x52   :  { %537 = vmatpush.msra.mxu0 %v116_v27  ;;  %557 = vmatpush.msra.mxu1 %v292_v28  ;;  %v39_v57 = vld [vmem:[%s2008_s1 + $0xd0] sm:$0xff]  ;;  %v28_v61 = vld [vmem:[%s2008_s1 + $0x78] sm:$0xff]  ;;  %v205_v0 = vld [vmem:[%s2008_s1 + $0x600] sm:$0xff] }
  0x53   :  { %577 = vmatpush.msra.mxu2 %v117_v29  ;;  %597 = vmatpush.msra.mxu3 %v293_v30  ;;  %v215_v58 = vld [vmem:[%s2008_s1 + $0x650] sm:$0xff]  ;;  %v204_v62 = vld [vmem:[%s2008_s1 + $0x5f8] sm:$0xff]  ;;  %v17_v1 = vld [vmem:[%s2008_s1 + $0x20] sm:$0xff] }
  0x54   :  { %538 = vmatpush.msra.mxu0 %v105_v31  ;;  %558 = vmatpush.msra.mxu1 %v281_v32  ;;  %v193_v2 = vld [vmem:[%s2008_s1 + $0x5a0] sm:$0xff]  ;;  %v18_v3 = vld [vmem:[%s2008_s1 + $0x28] sm:$0xff]  ;;  %v184_v5 = vld [vmem:[%s2008_s1 + $0x558] sm:$0xff] }
  0x55   :  { %578 = vmatpush.msra.mxu2 %v106_v33  ;;  %598 = vmatpush.msra.mxu3 %v282_v34  ;;  %v194_v4 = vld [vmem:[%s2008_s1 + $0x5a8] sm:$0xff]  ;;  %v360_v6 = vld [vmem:[%s2008_s1 + $0xad8] sm:$0xff]  ;;  %v185_v7 = vld [vmem:[%s2008_s1 + $0x560] sm:$0xff] }
  0x56   :  { %539 = vmatpush.msra.mxu0 %v94_v35  ;;  %559 = vmatpush.msra.mxu1 %v270_v36  ;;  %v361_v8 = vld [vmem:[%s2008_s1 + $0xae0] sm:$0xff]  ;;  %v174_v11 = vld [vmem:[%s2008_s1 + $0x508] sm:$0xff]  ;;  %v163_v15 = vld [vmem:[%s2008_s1 + $0x4b0] sm:$0xff] }
  0x57   :  { %579 = vmatpush.msra.mxu2 %v95_v37  ;;  %599 = vmatpush.msra.mxu3 %v271_v38  ;;  %v173_v9 = vld [vmem:[%s2008_s1 + $0x500] sm:$0xff]  ;;  %v350_v12 = vld [vmem:[%s2008_s1 + $0xa88] sm:$0xff]  ;;  %v339_v16 = vld [vmem:[%s2008_s1 + $0xa30] sm:$0xff] }
  0x58   :  { %540 = vmatpush.msra.mxu0 %v83_v39  ;;  %560 = vmatpush.msra.mxu1 %v259_v40  ;;  %v349_v10 = vld [vmem:[%s2008_s1 + $0xa80] sm:$0xff]  ;;  %v162_v13 = vld [vmem:[%s2008_s1 + $0x4a8] sm:$0xff]  ;;  %v151_v17 = vld [vmem:[%s2008_s1 + $0x450] sm:$0xff] }
  0x59   :  { %580 = vmatpush.msra.mxu2 %v84_v41  ;;  %600 = vmatpush.msra.mxu3 %v260_v42  ;;  %v338_v14 = vld [vmem:[%s2008_s1 + $0xa28] sm:$0xff]  ;;  %v327_v18 = vld [vmem:[%s2008_s1 + $0x9d0] sm:$0xff]  ;;  %v152_v19 = vld [vmem:[%s2008_s1 + $0x458] sm:$0xff] }
  0x5a   :  { %541 = vmatpush.msra.mxu0 %v72_v43  ;;  %561 = vmatpush.msra.mxu1 %v248_v44  ;;  %v328_v20 = vld [vmem:[%s2008_s1 + $0x9d8] sm:$0xff]  ;;  %v141_v23 = vld [vmem:[%s2008_s1 + $0x400] sm:$0xff]  ;;  %v130_v27 = vld [vmem:[%s2008_s1 + $0x3a8] sm:$0xff] }
  0x5b   :  { %581 = vmatpush.msra.mxu2 %v73_v45  ;;  %601 = vmatpush.msra.mxu3 %v249_v46  ;;  %v140_v21 = vld [vmem:[%s2008_s1 + $0x3f8] sm:$0xff]  ;;  %v317_v24 = vld [vmem:[%s2008_s1 + $0x980] sm:$0xff]  ;;  %v306_v28 = vld [vmem:[%s2008_s1 + $0x928] sm:$0xff] }
  0x5c   :  { %542 = vmatpush.msra.mxu0 %v61_v47  ;;  %562 = vmatpush.msra.mxu1 %v237_v48  ;;  %v316_v22 = vld [vmem:[%s2008_s1 + $0x978] sm:$0xff]  ;;  %v129_v25 = vld [vmem:[%s2008_s1 + $0x3a0] sm:$0xff]  ;;  %v118_v29 = vld [vmem:[%s2008_s1 + $0x348] sm:$0xff] }
  0x5d   :  { %582 = vmatpush.msra.mxu2 %v62_v51  ;;  %602 = vmatpush.msra.mxu3 %v238_v52  ;;  %v305_v26 = vld [vmem:[%s2008_s1 + $0x920] sm:$0xff]  ;;  %v294_v30 = vld [vmem:[%s2008_s1 + $0x8c8] sm:$0xff]  ;;  %v119_v31 = vld [vmem:[%s2008_s1 + $0x350] sm:$0xff] }
  0x5e   :  { %543 = vmatpush.msra.mxu0 %v50_v53  ;;  %563 = vmatpush.msra.mxu1 %v226_v54  ;;  %v295_v32 = vld [vmem:[%s2008_s1 + $0x8d0] sm:$0xff]  ;;  %v108_v35 = vld [vmem:[%s2008_s1 + $0x2f8] sm:$0xff]  ;;  %v97_v39 = vld [vmem:[%s2008_s1 + $0x2a0] sm:$0xff] }
  0x5f   :  { %583 = vmatpush.msra.mxu2 %v51_v55  ;;  %603 = vmatpush.msra.mxu3 %v227_v56  ;;  %v107_v33 = vld [vmem:[%s2008_s1 + $0x2f0] sm:$0xff]  ;;  %v284_v36 = vld [vmem:[%s2008_s1 + $0x878] sm:$0xff]  ;;  %v273_v40 = vld [vmem:[%s2008_s1 + $0x820] sm:$0xff] }
  0x60   :  { %544 = vmatpush.msra.mxu0 %v39_v57  ;;  %564 = vmatpush.msra.mxu1 %v215_v58  ;;  %v283_v34 = vld [vmem:[%s2008_s1 + $0x870] sm:$0xff]  ;;  %v96_v37 = vld [vmem:[%s2008_s1 + $0x298] sm:$0xff]  ;;  %v85_v41 = vld [vmem:[%s2008_s1 + $0x240] sm:$0xff] }
  0x61   :  { %584 = vmatpush.msra.mxu2 %v40_v59  ;;  %604 = vmatpush.msra.mxu3 %v216_v60  ;;  %v272_v38 = vld [vmem:[%s2008_s1 + $0x818] sm:$0xff]  ;;  %v261_v42 = vld [vmem:[%s2008_s1 + $0x7c0] sm:$0xff]  ;;  %v86_v43 = vld [vmem:[%s2008_s1 + $0x248] sm:$0xff] }
  0x62   :  { %545 = vmatpush.msra.mxu0 %v28_v61  ;;  %565 = vmatpush.msra.mxu1 %v204_v62  ;;  %v262_v44 = vld [vmem:[%s2008_s1 + $0x7c8] sm:$0xff]  ;;  %v75_v47 = vld [vmem:[%s2008_s1 + $0x1f0] sm:$0xff]  ;;  %v64_v53 = vld [vmem:[%s2008_s1 + $0x198] sm:$0xff] }
  0x63   :  { %585 = vmatpush.msra.mxu2 %v29_v63  ;;  %605 = vmatpush.msra.mxu3 %v205_v0  ;;  %v74_v45 = vld [vmem:[%s2008_s1 + $0x1e8] sm:$0xff]  ;;  %v251_v48 = vld [vmem:[%s2008_s1 + $0x770] sm:$0xff]  ;;  %v240_v54 = vld [vmem:[%s2008_s1 + $0x718] sm:$0xff] }
  0x64   :  { %546 = vmatpush.msra.mxu0 %v17_v1  ;;  %566 = vmatpush.msra.mxu1 %v193_v2  ;;  %v250_v46 = vld [vmem:[%s2008_s1 + $0x768] sm:$0xff]  ;;  %v63_v51 = vld [vmem:[%s2008_s1 + $0x190] sm:$0xff]  ;;  %v52_v55 = vld [vmem:[%s2008_s1 + $0x138] sm:$0xff] }
  0x65   :  { %586 = vmatpush.msra.mxu2 %v18_v3  ;;  %606 = vmatpush.msra.mxu3 %v194_v4  ;;  %v239_v52 = vld [vmem:[%s2008_s1 + $0x710] sm:$0xff]  ;;  %v228_v56 = vld [vmem:[%s2008_s1 + $0x6b8] sm:$0xff]  ;;  %v53_v57 = vld [vmem:[%s2008_s1 + $0x140] sm:$0xff] }
  0x66   :  { %611 = vmatpush.msrb.mxu0 %v184_v5  ;;  %631 = vmatpush.msrb.mxu1 %v360_v6  ;;  %v229_v58 = vld [vmem:[%s2008_s1 + $0x6c0] sm:$0xff]  ;;  %v42_v61 = vld [vmem:[%s2008_s1 + $0xe8] sm:$0xff]  ;;  %v31_v1 = vld [vmem:[%s2008_s1 + $0x90] sm:$0xff] }
  0x67   :  { %651 = vmatpush.msrb.mxu2 %v185_v7  ;;  %671 = vmatpush.msrb.mxu3 %v361_v8  ;;  %v41_v59 = vld [vmem:[%s2008_s1 + $0xe0] sm:$0xff]  ;;  %v218_v62 = vld [vmem:[%s2008_s1 + $0x668] sm:$0xff]  ;;  %v207_v2 = vld [vmem:[%s2008_s1 + $0x610] sm:$0xff] }
  0x68   :  { %612 = vmatpush.msrb.mxu0 %v173_v9  ;;  %632 = vmatpush.msrb.mxu1 %v349_v10  ;;  %v217_v60 = vld [vmem:[%s2008_s1 + $0x660] sm:$0xff]  ;;  %v30_v63 = vld [vmem:[%s2008_s1 + $0x88] sm:$0xff]  ;;  %v19_v3 = vld [vmem:[%s2008_s1 + $0x30] sm:$0xff] }
  0x69   :  { %652 = vmatpush.msrb.mxu2 %v174_v11  ;;  %672 = vmatpush.msrb.mxu3 %v350_v12  ;;  %v206_v0 = vld [vmem:[%s2008_s1 + $0x608] sm:$0xff]  ;;  %v195_v4 = vld [vmem:[%s2008_s1 + $0x5b0] sm:$0xff]  ;;  %v20_v5 = vld [vmem:[%s2008_s1 + $0x38] sm:$0xff] }
  0x6a   :  { %613 = vmatpush.msrb.mxu0 %v162_v13  ;;  %633 = vmatpush.msrb.mxu1 %v338_v14  ;;  %v196_v6 = vld [vmem:[%s2008_s1 + $0x5b8] sm:$0xff]  ;;  %v186_v7 = vld [vmem:[%s2008_s1 + $0x568] sm:$0xff]  ;;  %v187_v9 = vld [vmem:[%s2008_s1 + $0x570] sm:$0xff] }
  0x6b   :  { %653 = vmatpush.msrb.mxu2 %v163_v15  ;;  %673 = vmatpush.msrb.mxu3 %v339_v16  ;;  %v362_v8 = vld [vmem:[%s2008_s1 + $0xae8] sm:$0xff]  ;;  %v363_v10 = vld [vmem:[%s2008_s1 + $0xaf0] sm:$0xff]  ;;  %v176_v13 = vld [vmem:[%s2008_s1 + $0x518] sm:$0xff] }
  0x6c   :  { %614 = vmatpush.msrb.mxu0 %v151_v17  ;;  %634 = vmatpush.msrb.mxu1 %v327_v18  ;;  %v175_v11 = vld [vmem:[%s2008_s1 + $0x510] sm:$0xff]  ;;  %v352_v14 = vld [vmem:[%s2008_s1 + $0xa98] sm:$0xff]  ;;  %v153_v17 = vld [vmem:[%s2008_s1 + $0x460] sm:$0xff] }
  0x6d   :  { %654 = vmatpush.msrb.mxu2 %v152_v19  ;;  %674 = vmatpush.msrb.mxu3 %v328_v20  ;;  %v351_v12 = vld [vmem:[%s2008_s1 + $0xa90] sm:$0xff]  ;;  %v164_v15 = vld [vmem:[%s2008_s1 + $0x4b8] sm:$0xff]  ;;  %v329_v18 = vld [vmem:[%s2008_s1 + $0x9e0] sm:$0xff] }
  0x6e   :  { %615 = vmatpush.msrb.mxu0 %v140_v21  ;;  %635 = vmatpush.msrb.mxu1 %v316_v22  ;;  %v340_v16 = vld [vmem:[%s2008_s1 + $0xa38] sm:$0xff]  ;;  %v165_v19 = vld [vmem:[%s2008_s1 + $0x4c0] sm:$0xff]  ;;  %v142_v21 = vld [vmem:[%s2008_s1 + $0x408] sm:$0xff] }
  0x6f   :  { %655 = vmatpush.msrb.mxu2 %v141_v23  ;;  %675 = vmatpush.msrb.mxu3 %v317_v24  ;;  %v341_v20 = vld [vmem:[%s2008_s1 + $0xa40] sm:$0xff]  ;;  %v318_v22 = vld [vmem:[%s2008_s1 + $0x988] sm:$0xff]  ;;  %vm847_vm4 = vmor %vm846_vm3, %vm830_vm0 }
  0x70   :  { %616 = vmatpush.msrb.mxu0 %v129_v25  ;;  %636 = vmatpush.msrb.mxu1 %v305_v26  ;;  %v154_v23 = vld [vmem:[%s2008_s1 + $0x468] sm:$0xff]  ;;  %v131_v25 = vld [vmem:[%s2008_s1 + $0x3b0] sm:$0xff]  ;;  %vm849_vm6 = vmor %vm848_vm5, %vm847_vm4 }
  0x71   :  { %656 = vmatpush.msrb.mxu2 %v130_v27  ;;  %676 = vmatpush.msrb.mxu3 %v306_v28  ;;  %v330_v24 = vld [vmem:[%s2008_s1 + $0x9e8] sm:$0xff]  ;;  %v307_v26 = vld [vmem:[%s2008_s1 + $0x930] sm:$0xff] }
  0x72   :  { %617 = vmatpush.msrb.mxu0 %v118_v29  ;;  %637 = vmatpush.msrb.mxu1 %v294_v30  ;;  %v143_v27 = vld [vmem:[%s2008_s1 + $0x410] sm:$0xff]  ;;  %v120_v29 = vld [vmem:[%s2008_s1 + $0x358] sm:$0xff] }
  0x73   :  { %657 = vmatpush.msrb.mxu2 %v119_v31  ;;  %677 = vmatpush.msrb.mxu3 %v295_v32  ;;  %v319_v28 = vld [vmem:[%s2008_s1 + $0x990] sm:$0xff]  ;;  %v296_v30 = vld [vmem:[%s2008_s1 + $0x8d8] sm:$0xff] }
  0x74   :  { %618 = vmatpush.msrb.mxu0 %v107_v33  ;;  %638 = vmatpush.msrb.mxu1 %v283_v34  ;;  %v132_v31 = vld [vmem:[%s2008_s1 + $0x3b8] sm:$0xff]  ;;  %v109_v33 = vld [vmem:[%s2008_s1 + $0x300] sm:$0xff] }
  0x75   :  { %658 = vmatpush.msrb.mxu2 %v108_v35  ;;  %678 = vmatpush.msrb.mxu3 %v284_v36  ;;  %v308_v32 = vld [vmem:[%s2008_s1 + $0x938] sm:$0xff]  ;;  %v285_v34 = vld [vmem:[%s2008_s1 + $0x880] sm:$0xff] }
  0x76   :  { %619 = vmatpush.msrb.mxu0 %v96_v37  ;;  %639 = vmatpush.msrb.mxu1 %v272_v38  ;;  %v121_v35 = vld [vmem:[%s2008_s1 + $0x360] sm:$0xff]  ;;  %v98_v37 = vld [vmem:[%s2008_s1 + $0x2a8] sm:$0xff] }
  0x77   :  { %659 = vmatpush.msrb.mxu2 %v97_v39  ;;  %679 = vmatpush.msrb.mxu3 %v273_v40  ;;  %v297_v36 = vld [vmem:[%s2008_s1 + $0x8e0] sm:$0xff]  ;;  %v274_v38 = vld [vmem:[%s2008_s1 + $0x828] sm:$0xff] }
  0x78   :  { %620 = vmatpush.msrb.mxu0 %v85_v41  ;;  %640 = vmatpush.msrb.mxu1 %v261_v42  ;;  %v110_v39 = vld [vmem:[%s2008_s1 + $0x308] sm:$0xff]  ;;  %v87_v41 = vld [vmem:[%s2008_s1 + $0x250] sm:$0xff] }
  0x79   :  { %660 = vmatpush.msrb.mxu2 %v86_v43  ;;  %680 = vmatpush.msrb.mxu3 %v262_v44  ;;  %v286_v40 = vld [vmem:[%s2008_s1 + $0x888] sm:$0xff]  ;;  %v263_v42 = vld [vmem:[%s2008_s1 + $0x7d0] sm:$0xff] }
  0x7a   :  { %621 = vmatpush.msrb.mxu0 %v74_v45  ;;  %641 = vmatpush.msrb.mxu1 %v250_v46  ;;  %v99_v43 = vld [vmem:[%s2008_s1 + $0x2b0] sm:$0xff]  ;;  %v76_v45 = vld [vmem:[%s2008_s1 + $0x1f8] sm:$0xff] }
  0x7b   :  { %661 = vmatpush.msrb.mxu2 %v75_v47  ;;  %681 = vmatpush.msrb.mxu3 %v251_v48  ;;  %v275_v44 = vld [vmem:[%s2008_s1 + $0x830] sm:$0xff]  ;;  %v252_v46 = vld [vmem:[%s2008_s1 + $0x778] sm:$0xff] }
  0x7c   :  { %622 = vmatpush.msrb.mxu0 %v63_v51  ;;  %642 = vmatpush.msrb.mxu1 %v239_v52  ;;  %v88_v47 = vld [vmem:[%s2008_s1 + $0x258] sm:$0xff]  ;;  %v65_v51 = vld [vmem:[%s2008_s1 + $0x1a0] sm:$0xff] }
  0x7d   :  { %662 = vmatpush.msrb.mxu2 %v64_v53  ;;  %682 = vmatpush.msrb.mxu3 %v240_v54  ;;  %v264_v48 = vld [vmem:[%s2008_s1 + $0x7d8] sm:$0xff]  ;;  %v241_v52 = vld [vmem:[%s2008_s1 + $0x720] sm:$0xff] }
  0x7e   :  { %587 = vmatmul.f32.vlgmr.msra.gmra.mxu2 %v1251_v49  ;;  %607 = vmatmul.f32.vlgmr.msra.gmra.mxu3 %v1253_v50  ;;  %v77_v53 = vld [vmem:[%s2008_s1 + $0x200] sm:$0xff] }
  0x7f   :  { %623 = vmatpush.msrb.mxu0 %v52_v55  ;;  %643 = vmatpush.msrb.mxu1 %v228_v56  ;;  %v253_v54 = vld [vmem:[%s2008_s1 + $0x780] sm:$0xff]  ;;  %v54_v55 = vld [vmem:[%s2008_s1 + $0x148] sm:$0xff] }
  0x80   :  { %663 = vmatpush.msrb.mxu2 %v53_v57  ;;  %683 = vmatpush.msrb.mxu3 %v229_v58  ;;  %v230_v56 = vld [vmem:[%s2008_s1 + $0x6c8] sm:$0xff] }
  0x81   :  { %624 = vmatpush.msrb.mxu0 %v41_v59  ;;  %644 = vmatpush.msrb.mxu1 %v217_v60  ;;  %v66_v57 = vld [vmem:[%s2008_s1 + $0x1a8] sm:$0xff]  ;;  %v43_v59 = vld [vmem:[%s2008_s1 + $0xf0] sm:$0xff] }
  0x82   :  { %664 = vmatpush.msrb.mxu2 %v42_v61  ;;  %684 = vmatpush.msrb.mxu3 %v218_v62  ;;  %v242_v58 = vld [vmem:[%s2008_s1 + $0x728] sm:$0xff]  ;;  %v219_v60 = vld [vmem:[%s2008_s1 + $0x670] sm:$0xff] }
  0x83   :  { %625 = vmatpush.msrb.mxu0 %v30_v63  ;;  %645 = vmatpush.msrb.mxu1 %v206_v0  ;;  %v55_v61 = vld [vmem:[%s2008_s1 + $0x150] sm:$0xff]  ;;  %v32_v63 = vld [vmem:[%s2008_s1 + $0x98] sm:$0xff] }
  0x84   :  { %665 = vmatpush.msrb.mxu2 %v31_v1  ;;  %685 = vmatpush.msrb.mxu3 %v207_v2  ;;  %v231_v62 = vld [vmem:[%s2008_s1 + $0x6d0] sm:$0xff]  ;;  %v208_v0 = vld [vmem:[%s2008_s1 + $0x618] sm:$0xff] }
  0x85   :  { %547 = vmatmul.f32.vlgmr.msra.gmra.mxu0 %v1251_v49  ;;  %567 = vmatmul.f32.vlgmr.msra.gmra.mxu1 %v1253_v50  ;;  %v44_v1 = vld [vmem:[%s2008_s1 + $0xf8] sm:$0xff] }
  0x86   :  { %626 = vmatpush.msrb.mxu0 %v19_v3  ;;  %646 = vmatpush.msrb.mxu1 %v195_v4  ;;  %v220_v2 = vld [vmem:[%s2008_s1 + $0x678] sm:$0xff]  ;;  %v21_v3 = vld [vmem:[%s2008_s1 + $0x40] sm:$0xff] }
  0x87   :  { %666 = vmatpush.msrb.mxu2 %v20_v5  ;;  %686 = vmatpush.msrb.mxu3 %v196_v6  ;;  %v197_v4 = vld [vmem:[%s2008_s1 + $0x5c0] sm:$0xff]  ;;  %v188_v5 = vld [vmem:[%s2008_s1 + $0x578] sm:$0xff] }
  0x88   :  { %667 = vmatmul.f32.vlgmr.msrb.gmra.mxu2 %v1251_v49  ;;  %687 = vmatmul.f32.vlgmr.msrb.gmra.mxu3 %v1253_v50  ;;  %v364_v6 = vld [vmem:[%s2008_s1 + $0xaf8] sm:$0xff] }
  0x89   :  { %691 = vmatpush.msra.mxu0 %v186_v7  ;;  %711 = vmatpush.msra.mxu1 %v362_v8  ;;  %v33_v7 = vld [vmem:[%s2008_s1 + $0xa0] sm:$0xff] }
  0x8a   :  { %731 = vmatpush.msra.mxu2 %v187_v9  ;;  %751 = vmatpush.msra.mxu3 %v363_v10  ;;  %v209_v8 = vld [vmem:[%s2008_s1 + $0x620] sm:$0xff] }
  0x8b   :  { %692 = vmatpush.msra.mxu0 %v175_v11  ;;  %712 = vmatpush.msra.mxu1 %v351_v12  ;;  %v177_v9 = vld [vmem:[%s2008_s1 + $0x520] sm:$0xff]  ;;  %v22_v11 = vld [vmem:[%s2008_s1 + $0x48] sm:$0xff] }
  0x8c   :  { %732 = vmatpush.msra.mxu2 %v176_v13  ;;  %752 = vmatpush.msra.mxu3 %v352_v14  ;;  %v353_v10 = vld [vmem:[%s2008_s1 + $0xaa0] sm:$0xff]  ;;  %v198_v12 = vld [vmem:[%s2008_s1 + $0x5c8] sm:$0xff] }
  0x8d   :  { %693 = vmatpush.msra.mxu0 %v164_v15  ;;  %713 = vmatpush.msra.mxu1 %v340_v16  ;;  %v166_v13 = vld [vmem:[%s2008_s1 + $0x4c8] sm:$0xff]  ;;  %v155_v15 = vld [vmem:[%s2008_s1 + $0x470] sm:$0xff] }
  0x8e   :  { %627 = vmatmul.f32.vlgmr.msrb.gmra.mxu0 %v1251_v49  ;;  %647 = vmatmul.f32.vlgmr.msrb.gmra.mxu1 %v1253_v50  ;;  %v342_v14 = vld [vmem:[%s2008_s1 + $0xa48] sm:$0xff]  ;;  %v331_v16 = vld [vmem:[%s2008_s1 + $0x9f0] sm:$0xff] }
  0x8f   :  { %694 = vmatpush.msra.mxu0 %v153_v17  ;;  %714 = vmatpush.msra.mxu1 %v329_v18  ;;  %v144_v17 = vld [vmem:[%s2008_s1 + $0x418] sm:$0xff] }
  0x90   :  { %733 = vmatpush.msra.mxu2 %v165_v19  ;;  %753 = vmatpush.msra.mxu3 %v341_v20  ;;  %v320_v18 = vld [vmem:[%s2008_s1 + $0x998] sm:$0xff]  ;;  %v133_v19 = vld [vmem:[%s2008_s1 + $0x3c0] sm:$0xff] }
  0x91   :  { %695 = vmatpush.msra.mxu0 %v142_v21  ;;  %715 = vmatpush.msra.mxu1 %v318_v22  ;;  %v309_v20 = vld [vmem:[%s2008_s1 + $0x940] sm:$0xff]  ;;  %v122_v21 = vld [vmem:[%s2008_s1 + $0x368] sm:$0xff] }
  0x92   :  { %734 = vmatpush.msra.mxu2 %v154_v23  ;;  %754 = vmatpush.msra.mxu3 %v330_v24  ;;  %v298_v22 = vld [vmem:[%s2008_s1 + $0x8e8] sm:$0xff]  ;;  %v111_v23 = vld [vmem:[%s2008_s1 + $0x310] sm:$0xff]  ;;  %v276_v24 = vld [vmem:[%s2008_s1 + $0x838] sm:$0xff] }
  0x93   :  { %696 = vmatpush.msra.mxu0 %v131_v25  ;;  %716 = vmatpush.msra.mxu1 %v307_v26  ;;  %v89_v25 = vld [vmem:[%s2008_s1 + $0x260] sm:$0xff] }
  0x94   :  { %735 = vmatpush.msra.mxu2 %v143_v27  ;;  %755 = vmatpush.msra.mxu3 %v319_v28  ;;  %v265_v26 = vld [vmem:[%s2008_s1 + $0x7e0] sm:$0xff]  ;;  %v78_v27 = vld [vmem:[%s2008_s1 + $0x208] sm:$0xff] }
  0x95   :  { %697 = vmatpush.msra.mxu0 %v120_v29  ;;  %717 = vmatpush.msra.mxu1 %v296_v30  ;;  %v254_v28 = vld [vmem:[%s2008_s1 + $0x788] sm:$0xff]  ;;  %v67_v29 = vld [vmem:[%s2008_s1 + $0x1b0] sm:$0xff] }
  0x96   :  { %736 = vmatpush.msra.mxu2 %v132_v31  ;;  %756 = vmatpush.msra.mxu3 %v308_v32  ;;  %v243_v30 = vld [vmem:[%s2008_s1 + $0x730] sm:$0xff]  ;;  %v56_v31 = vld [vmem:[%s2008_s1 + $0x158] sm:$0xff] }
  0x97   :  { %698 = vmatpush.msra.mxu0 %v109_v33  ;;  %718 = vmatpush.msra.mxu1 %v285_v34  ;;  %v232_v32 = vld [vmem:[%s2008_s1 + $0x6d8] sm:$0xff] }
  0x98   :  { %737 = vmatpush.msra.mxu2 %v121_v35  ;;  %757 = vmatpush.msra.mxu3 %v297_v36 }
  0x99   :  { %699 = vmatpush.msra.mxu0 %v98_v37  ;;  %719 = vmatpush.msra.mxu1 %v274_v38  ;;  %v45_v37 = vld [vmem:[%s2008_s1 + $0x100] sm:$0xff] }
  0x9a   :  { %738 = vmatpush.msra.mxu2 %v110_v39  ;;  %758 = vmatpush.msra.mxu3 %v286_v40  ;;  %v221_v38 = vld [vmem:[%s2008_s1 + $0x680] sm:$0xff]  ;;  %v34_v39 = vld [vmem:[%s2008_s1 + $0xa8] sm:$0xff] }
  0x9b   :  { %700 = vmatpush.msra.mxu0 %v87_v41  ;;  %720 = vmatpush.msra.mxu1 %v263_v42  ;;  %v210_v40 = vld [vmem:[%s2008_s1 + $0x628] sm:$0xff]  ;;  %v23_v41 = vld [vmem:[%s2008_s1 + $0x50] sm:$0xff] }
  0x9c   :  { %739 = vmatpush.msra.mxu2 %v99_v43  ;;  %759 = vmatpush.msra.mxu3 %v275_v44  ;;  %v199_v42 = vld [vmem:[%s2008_s1 + $0x5d0] sm:$0xff]  ;;  %v868_v44 = vld.sshfl [vmem:[#allocation1] sm:$0xff pattern:$0x73625140] }
  0x9d   :  { %701 = vmatpush.msra.mxu0 %v76_v45  ;;  %721 = vmatpush.msra.mxu1 %v252_v46  ;;  %v869_v45 = vld.sshfl [vmem:[#allocation1 + $0x8] sm:$0xff pattern:$0x73625140] }
  0x9e   :  { %740 = vmatpush.msra.mxu2 %v88_v47  ;;  %760 = vmatpush.msra.mxu3 %v264_v48 }
  0x9f   :  { %702 = vmatpush.msra.mxu0 %v65_v51  ;;  %722 = vmatpush.msra.mxu1 %v241_v52 }
  0xa0   :  { %741 = vmatpush.msra.mxu2 %v77_v53  ;;  %761 = vmatpush.msra.mxu3 %v253_v54 }
  0xa1   :  { %703 = vmatpush.msra.mxu0 %v54_v55  ;;  %723 = vmatpush.msra.mxu1 %v230_v56 }
  0xa2   :  { %742 = vmatpush.msra.mxu2 %v66_v57  ;;  %762 = vmatpush.msra.mxu3 %v242_v58 }
  0xa3   :  { %704 = vmatpush.msra.mxu0 %v43_v59  ;;  %724 = vmatpush.msra.mxu1 %v219_v60 }
  0xa4   :  { %743 = vmatpush.msra.mxu2 %v55_v61  ;;  %763 = vmatpush.msra.mxu3 %v231_v62 }
  0xa5   :  { %705 = vmatpush.msra.mxu0 %v32_v63  ;;  %725 = vmatpush.msra.mxu1 %v208_v0 }
  0xa6   :  { %744 = vmatpush.msra.mxu2 %v44_v1  ;;  %764 = vmatpush.msra.mxu3 %v220_v2 }
  0xa7   :  { %706 = vmatpush.msra.mxu0 %v21_v3  ;;  %726 = vmatpush.msra.mxu1 %v197_v4 }
  0xa8   :  { %745 = vmatpush.msra.mxu2 %v33_v7  ;;  %765 = vmatpush.msra.mxu3 %v209_v8 }
  0xa9   :  { %771 = vmatpush.msrb.mxu0 %v188_v5  ;;  %791 = vmatpush.msrb.mxu1 %v364_v6 }
  0xaa   :  { %746 = vmatpush.msra.mxu2 %v22_v11  ;;  %766 = vmatpush.msra.mxu3 %v198_v12 }
  0xab   :  { %772 = vmatpush.msrb.mxu0 %v177_v9  ;;  %792 = vmatpush.msrb.mxu1 %v353_v10 }
  0xac   :  { %747 = vmatmul.f32.vlgmr.msra.gmra.mxu2 %v1251_v49  ;;  %767 = vmatmul.f32.vlgmr.msra.gmra.mxu3 %v1253_v50 }
  0xad   :  { %773 = vmatpush.msrb.mxu0 %v166_v13  ;;  %793 = vmatpush.msrb.mxu1 %v342_v14 }
  0xae   :  { %707 = vmatmul.f32.vlgmr.msra.gmra.mxu0 %v1251_v49  ;;  %727 = vmatmul.f32.vlgmr.msra.gmra.mxu1 %v1253_v50  ;;  %v287_v49 = vld [vmem:[%s2008_s1 + $0x890] sm:$0xff]  ;;  %v100_v50 = vld [vmem:[%s2008_s1 + $0x2b8] sm:$0xff]  ;;  %s896_s1 = smov [#allocation2]  }
  0xaf   :  { %774 = vmatpush.msrb.mxu0 %v155_v15  ;;  %794 = vmatpush.msrb.mxu1 %v331_v16  ;;  %s856_s24 = sshll.u32 %s896_s1, 4  ;;  %s857_s24 = int_to_ptr.vmem [resolvable:$true] %s856_s24 }
  0xb1   :  { %775 = vmatpush.msrb.mxu0 %v144_v17  ;;  %795 = vmatpush.msrb.mxu1 %v320_v18 }
  0xb3   :  { %776 = vmatpush.msrb.mxu0 %v133_v19  ;;  %796 = vmatpush.msrb.mxu1 %v309_v20 }
  0xb5   :  { %777 = vmatpush.msrb.mxu0 %v122_v21  ;;  %797 = vmatpush.msrb.mxu1 %v298_v22 }
  0xb7   :  { %778 = vmatpush.msrb.mxu0 %v111_v23  ;;  %798 = vmatpush.msrb.mxu1 %v287_v49 }
  0xb9   :  { %779 = vmatpush.msrb.mxu0 %v100_v50  ;;  %799 = vmatpush.msrb.mxu1 %v276_v24 }
  0xbb   :  { %780 = vmatpush.msrb.mxu0 %v89_v25  ;;  %800 = vmatpush.msrb.mxu1 %v265_v26 }
  0xbd   :  { %781 = vmatpush.msrb.mxu0 %v78_v27  ;;  %801 = vmatpush.msrb.mxu1 %v254_v28  ;;  %v428_v33 = vpop.f32.mrf.mxu2  ;;  %v448_v34 = vpop.f32.mrf.mxu3 }
  0xbe   :  { %v388_v35 = vpop.f32.mrf.mxu0  ;;  %v408_v36 = vpop.f32.mrf.mxu1  ;;  %v449_v43 = vadd.f32 %v448_v34, %v428_v33 }
  0xbf   :  { %782 = vmatpush.msrb.mxu0 %v67_v29  ;;  %802 = vmatpush.msrb.mxu1 %v243_v30  ;;  %v409_v53 = vadd.f32 %v408_v36, %v388_v35 }
  0xc0   :  { %v822_v54 = vrot.slane %v449_v43, 6 }
  0xc1   :  { %783 = vmatpush.msrb.mxu0 %v56_v31  ;;  %803 = vmatpush.msrb.mxu1 %v232_v32 }
  0xc2   :  { %v831_v58 = vsel %vm830_vm0, %v409_v53, %v822_v54 }
  0xc3   :  { %784 = vmatpush.msrb.mxu0 %v45_v37  ;;  %804 = vmatpush.msrb.mxu1 %v221_v38 }
  0xc5   :  { %785 = vmatpush.msrb.mxu0 %v34_v39  ;;  %805 = vmatpush.msrb.mxu1 %v210_v40 }
  0xc7   :  { %786 = vmatpush.msrb.mxu0 %v23_v41  ;;  %806 = vmatpush.msrb.mxu1 %v199_v42  ;;  %v508_v46 = vpop.f32.mrf.mxu2  ;;  %v528_v47 = vpop.f32.mrf.mxu3 }
  0xc8   :  { %787 = vmatmul.f32.vlgmr.msrb.gmra.mxu0 %v868_v44  ;;  %807 = vmatmul.f32.vlgmr.msrb.gmra.mxu1 %v869_v45  ;;  %v468_v48 = vpop.f32.mrf.mxu0  ;;  %v488_v51 = vpop.f32.mrf.mxu1  ;;  %v529_v52 = vadd.f32 %v528_v47, %v508_v46 }
  0xc9   :  { %v489_v55 = vadd.f32 %v488_v51, %v468_v48 }
  0xca   :  { %v824_v56 = vrot.slane %v529_v52, 2 }
  0xcb   :  { %v823_v57 = vrot.slane %v489_v55, 4 }
  0xcd   :  { %v833_v59 = vsel %vm832_vm1, %v823_v57, %v824_v56 }
  0xce   :  { %v835_v60 = vsel %vm834_vm2, %v831_v58, %v833_v59 }
  0xcf   :  { %844 = vst [vmem:[#allocation2] sm:$0xff] %v835_v60 }
 0x101   :  { %v588_v61 = vpop.f32.mrf.mxu2  ;;  %v608_v62 = vpop.f32.mrf.mxu3 }
 0x102   :  { %v548_v63 = vpop.f32.mrf.mxu0  ;;  %v568_v0 = vpop.f32.mrf.mxu1  ;;  %v609_v1 = vadd.f32 %v608_v62, %v588_v61 }
 0x103   :  { %v569_v7 = vadd.f32 %v568_v0, %v548_v63 }
 0x104   :  { %v825_v8 = vrot.slane %v609_v1, 6 }
 0x106   :  { %v836_v12 = vsel %vm830_vm0, %v569_v7, %v825_v8 }
 0x10b   :  { %v628_v2 = vpop.f32.mrf.mxu0  ;;  %v648_v3 = vpop.f32.mrf.mxu1 }
 0x10c   :  { %v649_v4 = vadd.f32 %v648_v3, %v628_v2  ;;  %v668_v5 = vpop.f32.mrf.mxu2  ;;  %v688_v6 = vpop.f32.mrf.mxu3 }
 0x10d   :  { %v689_v9 = vadd.f32 %v688_v6, %v668_v5 }
 0x10e   :  { %v826_v10 = vrot.slane %v649_v4, 4 }
 0x10f   :  { %v827_v11 = vrot.slane %v689_v9, 2 }
 0x111   :  { %v837_v13 = vsel %vm832_vm1, %v826_v10, %v827_v11 }
 0x112   :  { %v838_v14 = vsel %vm834_vm2, %v836_v12, %v837_v13 }
 0x113   :  { %845 = vst [vmem:[#allocation2 + $0x8] sm:$0xff] %v838_v14 }
 0x12b   :  { %v708_v15 = vpop.f32.mrf.mxu0  ;;  %v728_v16 = vpop.f32.mrf.mxu1 }
 0x12c   :  { %v729_v21 = vadd.f32 %v728_v16, %v708_v15 }
 0x12f   :  { %v748_v17 = vpop.f32.mrf.mxu2  ;;  %v768_v18 = vpop.f32.mrf.mxu3 }
 0x130   :  { %v769_v19 = vadd.f32 %v768_v18, %v748_v17 }
 0x132   :  { %v828_v20 = vrot.slane %v769_v19, 6 }
 0x134   :  { %v839_v24 = vsel %vm830_vm0, %v729_v21, %v828_v20 }
 0x145   :  { %v788_v22 = vpop.f32.mrf.mxu0  ;;  %v808_v23 = vpop.f32.mrf.mxu1 }
 0x146   :  { %v809_v49 = vadd.f32 %v808_v23, %v788_v22 }
 0x148   :  { %v829_v50 = vrot.slane %v809_v49, 4 }
 0x14a   :  { %v840_v25 = vsel %vm834_vm2, %v839_v24, %v829_v50 }
 0x14b   :  { %850 = vst.msk [vmem:[#allocation2 + $0x10] sm:$0x3f] %vm849_vm6, %v840_v25 }
 0x14c   :  { %861 = dma.vmem_to_hbm [thread:$0]  %s857_s24, 352, %s859_s27, [#allocation3]  }
 0x14d   :  { %894 = dma.done.wait [#allocation3], 352  }
 0x14e   :  { %895 = vsyncadd [#allocation3], 4294966944 }
 0x14f   :  { %866 = vsyncpa [#allocation3], 1 }

</bundles_post_ra>
